<compile_context>
chip_gen: v7x
topology: tpu7x:2x2x1
jax: 0.10.0
libtpu: 0.0.40
codegen_flags: <defaults>
</compile_context>

<pallas_src>
import functools

import jax
import jax.numpy as jnp
from jax.experimental import pallas as pl
from jax.experimental.pallas import tpu as pltpu


_COMPUTE_CHUNK = 128  # batch rows processed per inner compute step


def _protonet_tile_kernel(embs_ref, q_ref, out_ref, *, bb, shots):
    """One batch tile: embs (bb, W, S, E), q (bb, E) -> out (bb, W)."""
    s = float(shots)
    inv_s2 = 1.0 / (s * s)
    # Static Python loop over sub-chunks of the batch tile (static ref slices
    # are free views; each chunk's values stay a few hundred vregs).
    for c0 in range(0, bb, _COMPUTE_CHUNK):
        c1 = min(c0 + _COMPUTE_CHUNK, bb)
        embs = embs_ref[c0:c1]                        # (c, W, S, E)
        shot_sum = jnp.sum(embs, axis=2)              # (c, W, E)  sublane reduce
        q = q_ref[c0:c1]                              # (c, E)
        diff = shot_sum - s * q[:, None, :]           # (c, W, E)  VPU
        out_ref[c0:c1, :] = (-inv_s2) * jnp.sum(diff * diff, axis=-1)  # (c, W)


def protonet_forward(embs, query_embs, *, batch_tile_bytes=8 * 1024 * 1024):
    """embs: (**, W, S, E), query_embs: (**, E) -> (**, W) float32."""
    *batch_dims, W, S, E = embs.shape
    assert tuple(query_embs.shape) == (*batch_dims, E), (embs.shape, query_embs.shape)
    embs = jnp.asarray(embs, jnp.float32)
    query_embs = jnp.asarray(query_embs, jnp.float32)

    # Flatten arbitrary leading (**) dims into a single batch dim.
    B = 1
    for d in batch_dims:
        B *= d
    embs2 = embs.reshape(B, W, S, E)
    q2 = query_embs.reshape(B, E)

    # Choose the batch tile from a VMEM byte budget for the embs buffer.
    per_elem_bytes = W * S * E * 4
    bb = max(1, batch_tile_bytes // per_elem_bytes)
    if bb >= B:
        bb = B                                  # single tile covers the batch
    else:
        bb = max(8, (bb // 8) * 8)              # sublane-friendly when tiling
    num_tiles = pl.cdiv(B, bb)
    b_pad = num_tiles * bb
    if b_pad != B:                              # pad ragged batch with zeros
        embs2 = jnp.pad(embs2, ((0, b_pad - B), (0, 0), (0, 0), (0, 0)))
        q2 = jnp.pad(q2, ((0, b_pad - B), (0, 0)))

    kernel = functools.partial(_protonet_tile_kernel, bb=bb, shots=S)

    out = pl.pallas_call(
        kernel,
        out_shape=jax.ShapeDtypeStruct((b_pad, W), jnp.float32),
        grid_spec=pltpu.PrefetchScalarGridSpec(
            num_scalar_prefetch=0,
            grid=(num_tiles,),
            in_specs=[
                pl.BlockSpec((bb, W, S, E), lambda b: (b, 0, 0, 0)),
                pl.BlockSpec((bb, E), lambda b: (b, 0)),
            ],
            out_specs=pl.BlockSpec((bb, W), lambda b: (b, 0)),
        ),
        compiler_params=pltpu.CompilerParams(
            dimension_semantics=("parallel",),
            vmem_limit_bytes=48 * 1024 * 1024,
        ),
    )(embs2, q2)

    out = out[:B]
    return out.reshape(*batch_dims, W)


if __name__ == "__main__":
    key = jax.random.PRNGKey(0)
    k1, k2, k3, k4 = jax.random.split(key, 4)

    def reference(embs, query):
        proto = embs.mean(axis=-2)
        return -((proto - query[..., None, :]) ** 2).sum(-1)

    # Case 1: shapes consistent with the module (batch=2, ways=4, shots=8, emb=128).
    B, W, S, E = 2, 4, 8, 128
    embs = jax.random.normal(k1, (B, W, S, E), dtype=jnp.float32)
    query = jax.random.normal(k2, (B, E), dtype=jnp.float32)
    out = jax.block_until_ready(protonet_forward(embs, query))
    ref = reference(embs, query)
    assert out.shape == (B, W)
    assert jnp.allclose(out, ref, atol=1e-3, rtol=1e-3), (out, ref)

    # Case 2: force the multi-tile + ragged-batch padding path with a tiny budget.
    B2 = 20
    embs2 = jax.random.normal(k3, (B2, W, S, E), dtype=jnp.float32)
    query2 = jax.random.normal(k4, (B2, E), dtype=jnp.float32)
    out2 = jax.block_until_ready(
        protonet_forward(embs2, query2, batch_tile_bytes=8 * W * S * E * 4))
    ref2 = reference(embs2, query2)
    assert out2.shape == (B2, W)
    assert jnp.allclose(out2, ref2, atol=1e-3, rtol=1e-3), (out2, ref2)

    print("KERNEL_OK")
</pallas_src>

<mosaic_0001>
module attributes {stable_mosaic.version = 11 : i64} {
  func.func @_protonet_tile_kernel(%arg0: i32, %arg1: memref<2x4x8x128xf32, #tpu.memory_space<vmem>>, %arg2: memref<2x128xf32, #tpu.memory_space<vmem>>, %arg3: memref<2x4xf32, #tpu.memory_space<vmem>>) attributes {dimension_semantics = [#tpu.dimension_semantics<parallel>], iteration_bounds = array<i64: 1>, scalar_prefetch = 0 : i64, scratch_operands = 0 : i64, tpu.core_type = #tpu.core_type<tc>, window_params = [{transform_indices = @transform_0, window_bounds = array<i64: 2, 4, 8, 128>}, {transform_indices = @transform_1, window_bounds = array<i64: 2, 128>}, {transform_indices = @transform_2, window_bounds = array<i64: 2, 4>}]} {
    %c0 = arith.constant 0 : index
    %c0_0 = arith.constant 0 : index
    %c0_1 = arith.constant 0 : index
    %c0_2 = arith.constant 0 : index
    %0 = vector.load %arg1[%c0, %c0_0, %c0_1, %c0_2] : memref<2x4x8x128xf32, #tpu.memory_space<vmem>>, vector<2x4x8x128xf32>
    %cst = arith.constant dense<0.000000e+00> : vector<2x4x128xf32>
    %1 = vector.multi_reduction <add>, %0, %cst [2] : vector<2x4x8x128xf32> to vector<2x4x128xf32>
    %c0_3 = arith.constant 0 : index
    %c0_4 = arith.constant 0 : index
    %2 = vector.load %arg2[%c0_3, %c0_4] : memref<2x128xf32, #tpu.memory_space<vmem>>, vector<2x128xf32>
    %3 = vector.shape_cast %2 : vector<2x128xf32> to vector<2x1x128xf32>
    %cst_5 = arith.constant 8.000000e+00 : f32
    %4 = vector.broadcast %cst_5 : f32 to vector<2x1x128xf32>
    %5 = arith.mulf %4, %3 : vector<2x1x128xf32>
    %6 = vector.broadcast %5 : vector<2x1x128xf32> to vector<2x4x128xf32>
    %7 = arith.subf %1, %6 : vector<2x4x128xf32>
    %8 = arith.mulf %7, %7 : vector<2x4x128xf32>
    %cst_6 = arith.constant dense<0.000000e+00> : vector<2x4xf32>
    %9 = vector.multi_reduction <add>, %8, %cst_6 [2] : vector<2x4x128xf32> to vector<2x4xf32>
    %cst_7 = arith.constant -1.562500e-02 : f32
    %10 = vector.broadcast %cst_7 : f32 to vector<2x4xf32>
    %11 = arith.mulf %10, %9 : vector<2x4xf32>
    %c0_8 = arith.constant 0 : index
    %c0_9 = arith.constant 0 : index
    %12 = vector.load %arg3[%c0_8, %c0_9] : memref<2x4xf32, #tpu.memory_space<vmem>>, vector<2x4xf32>
    tpu.vector_store %arg3[%c0_8, %c0_9], %11 {strides = array<i32>} : memref<2x4xf32, #tpu.memory_space<vmem>>, vector<2x4xf32>,
    return
  }
  func.func @transform_0(%arg0: i32) -> (i32, i32, i32, i32) {
    %c0_i32 = arith.constant 0 : i32
    %c0_i32_0 = arith.constant 0 : i32
    %c0_i32_1 = arith.constant 0 : i32
    %c0_i32_2 = arith.constant 0 : i32
    return %arg0, %c0_i32, %c0_i32_0, %c0_i32_1 : i32, i32, i32, i32
  }
  func.func @transform_1(%arg0: i32) -> (i32, i32) {
    %c0_i32 = arith.constant 0 : i32
    %c0_i32_0 = arith.constant 0 : i32
    return %arg0, %c0_i32 : i32, i32
  }
  func.func @transform_2(%arg0: i32) -> (i32, i32) {
    %c0_i32 = arith.constant 0 : i32
    %c0_i32_0 = arith.constant 0 : i32
    return %arg0, %c0_i32 : i32, i32
  }
}

</mosaic_0001>

<bundles_post_ra>
// kernel: tpu_custom_call.1
= control target key start
LH: loop header
LB: loop body
LE: loop exit
PB: predicated region body
PF: predicated region fallthrough
CT: control target
= control target key end

     0   :  { %7 = vsyncpa [#allocation3], 0  ;;  %s330_s0 = inlined_call_operand.hbm [shape: f32[2,4,8,128], index: 0, kind: input, shape index: {}]   ;;  %s331_s1 = inlined_call_operand.vmem [shape: f32[2,128], index: 1, kind: input, shape index: {}]   ;;  %s332_s2 = inlined_call_operand.hbm [shape: f32[2,4], index: 2, kind: output, shape index: {}]  }
   0x1   :  { %8 = vsyncpa [#allocation4], 0  ;;  %s257_s9 = smov [#allocation2]   ;;  %s209_s13 = scalar_lea.hbm %s330_s0, 1024 }
   0x2   :  { %s14_s10 = sshll.u32 %s257_s9, 4  ;;  %p210_p0 = scmp.ne.s32.totalorder %s330_s0, %s209_s13  ;;  %s15_s10 = int_to_ptr.vmem [resolvable:$true] %s14_s10 }
   0x3   :  { %p213_p1 = scmp.lt.u32.totalorder %s209_s13, %s330_s0 }
   0x5   :  { %p215_p2 = pnand %p213_p1, %p210_p0 }
   0x7   :  { %218 = shalt.err (!%p215_p2)
}
   0x8   :  { %s219_s18 = scalar_lea.vmem %s15_s10, 1024  ;;  %p224_p4 = scmp.lt.s32.totalorder %s15_s10, %s15_s10 }
   0x9   :  { %p220_p3 = scmp.ne.s32.totalorder %s15_s10, %s219_s18  ;;  %p225_p5 = scmp.lt.s32.totalorder %s219_s18, %s219_s18 }
   0xb   :  { %p226_p6 = por %p225_p5, %p224_p4 }
   0xd   :  { %p227_p7 = pnand %p226_p6, %p220_p3 }
   0xf   :  { %230 = shalt.err (!%p227_p7)
}
  0x10   :  { %s258_s19 = smov 128   ;;  %s259_s20 = smov 8  }
  0x11   :  { %20 = dma.hbm_to_vmem [thread:$0]  %s330_s0, 1024, %s15_s10, [#allocation3], %s258_s19, %s258_s19, %s259_s20  }
  0x12   :  { %253 = dma.done.wait [#allocation3], 1024  }
  0x13   :  { %254 = vsyncadd [#allocation3], 4294966272  ;;  %v95_v0 = vlaneseq  ;;  %v260_v1 = vmov 1966171168   ;;  %v26_v7 = vld [vmem:[#allocation2] sm:$0xff]  ;;  %v27_v8 = vld [vmem:[#allocation2 + $0x8] sm:$0xff] }
  0x14   :  { %v93_v2 = vunpack.c.l.s4 %v260_v1  ;;  %v28_v9 = vld [vmem:[#allocation2 + $0x10] sm:$0xff]  ;;  %v29_v11 = vld [vmem:[#allocation2 + $0x18] sm:$0xff]  ;;  %v34_v12 = vrot.slane %v26_v7, 4  ;;  %v40_v13 = vrot.slane %v27_v8, 4  ;;  %v30_v15 = vld [vmem:[#allocation2 + $0x20] sm:$0xff]  ;;  %vm147_vm0 = vcmask 1041409  }
  0x15   :  { %v289_v3 = vshrl.u32 %v95_v0, 7  ;;  %v175_v4 = vand.u32 127, %v95_v0  ;;  %v46_v14 = vrot.slane %v28_v9, 4  ;;  %v31_v16 = vld [vmem:[#allocation2 + $0x28] sm:$0xff]  ;;  %v52_v17 = vrot.slane %v29_v11, 4  ;;  %v32_v19 = vld [vmem:[#allocation2 + $0x30] sm:$0xff] }
  0x16   :  { %v94_v5 = vunpack.c.0.s8 %v93_v2  ;;  %v203_v18 = vld.sshfl [vmem:[%s331_s1] sm:$0x11 pattern:$0x75316420]  ;;  %v35_v20 = vadd.f32 %v34_v12, %v26_v7  ;;  %v41_v21 = vadd.f32 %v40_v13, %v27_v8  ;;  %v58_v26 = vrot.slane %v30_v15, 4  ;;  %v33_v39 = vld [vmem:[#allocation2 + $0x38] sm:$0xff] }
  0x17   :  { %v292_v6 = vsub.s32 %v175_v4, %v289_v3  ;;  %v47_v22 = vadd.f32 %v46_v14, %v28_v9  ;;  %v114_v23 = vsub.s32 0, %v289_v3  ;;  %v53_v24 = vadd.f32 %v52_v17, %v29_v11  ;;  %s261_s1 = smov [#allocation5]  }
  0x18   :  { %v295_v10 = vsub.s32 %v94_v5, %v289_v3  ;;  %v64_v27 = vrot.slane %v31_v16, 4  ;;  %v36_v28 = vrot.slane %v35_v20, 2  ;;  %v42_v29 = vrot.slane %v41_v21, 2  ;;  %s194_s24 = sshll.u32 %s261_s1, 4  ;;  %s195_s24 = int_to_ptr.vmem [resolvable:$true] %s194_s24 }
  0x19   :  { %v48_v30 = vrot.slane %v47_v22, 2  ;;  %v70_v31 = vrot.slane %v32_v19, 4  ;;  %v54_v32 = vrot.slane %v53_v24, 2  ;;  %v59_v34 = vadd.f32 %v58_v26, %v30_v15  ;;  %s231_s25 = scalar_lea.vmem %s195_s24, 32  ;;  %p236_p9 = scmp.lt.s32.totalorder %s195_s24, %s195_s24 }
  0x1a   :  { %v98_v25 = vrot.slane %v203_v18, %v295_v10  ;;  %v65_v35 = vadd.f32 %v64_v27, %v31_v16  ;;  %v37_v36 = vadd.f32 %v36_v28, %v35_v20  ;;  %v43_v37 = vadd.f32 %v42_v29, %v41_v21  ;;  %p232_p8 = scmp.ne.s32.totalorder %s195_s24, %s231_s25  ;;  %p237_p10 = scmp.lt.s32.totalorder %s231_s25, %s231_s25 }
  0x1b   :  { %v49_v38 = vadd.f32 %v48_v30, %v47_v22  ;;  %v71_v40 = vadd.f32 %v70_v31, %v32_v19  ;;  %v55_v41 = vadd.f32 %v54_v32, %v53_v24  ;;  %v60_v43 = vrot.slane %v59_v34, 2 }
  0x1c   :  { %v108_v33 = vmul.f32 8.0, %v98_v25  ;;  %v66_v44 = vrot.slane %v65_v35, 2  ;;  %v38_v45 = vrot.slane %v37_v36, 1  ;;  %v44_v46 = vrot.slane %v43_v37, 1  ;;  %p238_p11 = por %p237_p10, %p236_p9 }
  0x1d   :  { %v50_v47 = vrot.slane %v49_v38, 1  ;;  %v72_v48 = vrot.slane %v71_v40, 2  ;;  %v56_v49 = vrot.slane %v55_v41, 1  ;;  %v61_v50 = vadd.f32 %v60_v43, %v59_v34 }
  0x1e   :  { %v115_v42 = vrot.slane %v108_v33, %v114_v23  ;;  %v67_v51 = vadd.f32 %v66_v44, %v65_v35  ;;  %v76_v52 = vrot.slane %v33_v39, 4  ;;  %v39_v53 = vadd.f32 %v38_v45, %v37_v36  ;;  %p239_p12 = pnand %p238_p11, %p232_p8 }
  0x1f   :  { %v45_v54 = vadd.f32 %v44_v46, %v43_v37  ;;  %v51_v55 = vadd.f32 %v50_v47, %v49_v38  ;;  %v73_v56 = vadd.f32 %v72_v48, %v71_v40  ;;  %v57_v57 = vadd.f32 %v56_v49, %v55_v41 }
  0x20   :  { %v91_v58 = vcombine.high %v203_v18, %v203_v18  ;;  %v62_v59 = vrot.slane %v61_v50, 1  ;;  %v77_v60 = vadd.f32 %v76_v52, %v33_v39  ;;  %v122_v61 = vsub.f32 %v39_v53, %v115_v42 }
  0x21   :  { %v123_v62 = vsub.f32 %v45_v54, %v115_v42  ;;  %v124_v63 = vsub.f32 %v51_v55, %v115_v42  ;;  %v68_v0 = vrot.slane %v67_v51, 1  ;;  %v125_v1 = vsub.f32 %v57_v57, %v115_v42 }
  0x22   :  { %v74_v2 = vrot.slane %v73_v56, 1  ;;  %v78_v4 = vrot.slane %v77_v60, 2  ;;  %v130_v5 = vmul.f32 %v122_v61, %v122_v61  ;;  %vm150_vm1 = vcmask 1042434  }
  0x23   :  { %v131_v7 = vmul.f32 %v123_v62, %v123_v62  ;;  %v132_v8 = vmul.f32 %v124_v63, %v124_v63  ;;  %v133_v9 = vmul.f32 %v125_v1, %v125_v1  ;;  %vm153_vm2 = vcmask 1043459  }
  0x24   :  { %v79_v11 = vadd.f32 %v78_v4, %v77_v60  ;;  %v105_v12 = vrot.slane %v91_v58, %v295_v10  ;;  %v63_v15 = vadd.f32 %v62_v59, %v61_v50  ;;  %v69_v16 = vadd.f32 %v68_v0, %v67_v51 }
  0x25   :  { %v146_v13 = vrot.slane %v131_v7, 7  ;;  %v149_v14 = vrot.slane %v132_v8, 6  ;;  %v152_v17 = vrot.slane %v133_v9, 5  ;;  %v75_v18 = vadd.f32 %v74_v2, %v73_v56 }
  0x26   :  { %v80_v19 = vrot.slane %v79_v11, 1  ;;  %v109_v20 = vmul.f32 8.0, %v105_v12  ;;  %vm163_vm3 = vcmask 1043456   ;;  %vm186_vm4 = vcmask 25600  }
  0x27   :  { %v148_v21 = vsel %vm147_vm0, %v146_v13, %v130_v5 }
  0x28   :  { %v151_v22 = vsel %vm150_vm1, %v149_v14, %v148_v21  ;;  %v81_v24 = vadd.f32 %v80_v19, %v79_v11  ;;  %v119_v25 = vrot.slane %v109_v20, %v114_v23 }
  0x29   :  { %v154_v26 = vsel %vm153_vm2, %v152_v17, %v151_v22 }
  0x2a   :  { %v164_v10 = vsel %vm163_vm3, %v154_v26, 0.0  ;;  %v126_v27 = vsub.f32 %v63_v15, %v119_v25  ;;  %v127_v28 = vsub.f32 %v69_v16, %v119_v25  ;;  %v128_v29 = vsub.f32 %v75_v18, %v119_v25 }
  0x2b   :  { %165 = vadd.xlane.f32.xlu0 %v164_v10  ;;  %v129_v30 = vsub.f32 %v81_v24, %v119_v25 }
  0x2c   :  { %v134_v31 = vmul.f32 %v126_v27, %v126_v27  ;;  %v135_v32 = vmul.f32 %v127_v28, %v127_v28  ;;  %v136_v33 = vmul.f32 %v128_v29, %v128_v29 }
  0x2d   :  { %v137_v34 = vmul.f32 %v129_v30, %v129_v30 }
  0x2e   :  { %v155_v35 = vrot.slane %v135_v32, 7  ;;  %v157_v36 = vrot.slane %v136_v33, 6 }
  0x2f   :  { %v159_v37 = vrot.slane %v137_v34, 5 }
  0x30   :  { %v156_v38 = vsel %vm147_vm0, %v155_v35, %v134_v31 }
  0x31   :  { %v158_v3 = vsel %vm150_vm1, %v157_v36, %v156_v38 }
  0x32   :  { %v160_v23 = vsel %vm153_vm2, %v159_v37, %v158_v3 }
  0x33   :  { %v167_v39 = vsel %vm163_vm3, %v160_v23, 0.0 }
  0x34   :  { %168 = vadd.xlane.f32.xlu0 %v167_v39 }
  0xb8   :  { %v166_v40 = vpop.xlane.xlu0 %165 }
  0xb9   :  { %v170_v41 = vmul.f32 -0.015625, %v166_v40 }
  0xbb   :  { %v179_v44 = vrot.slane %v170_v41, %v292_v6 }
  0xc1   :  { %v169_v42 = vpop.xlane.xlu0 %168 }
  0xc2   :  { %v171_v43 = vmul.f32 -0.015625, %v169_v42 }
  0xc4   :  { %v183_v45 = vrot.slane %v171_v43, %v292_v6 }
  0xc6   :  { %v184_v46 = vsel %vm147_vm0, %v183_v45, %v179_v44 }
  0xc7   :  { %187 = vst.msk [vmem:[#allocation5] sm:$0x3] %vm186_vm4, %v184_v46 }
  0xc8   :  { %242 = shalt.err (!%p239_p12)
}
  0xc9   :  { %s243_s28 = scalar_lea.hbm %s332_s2, 32 }
  0xca   :  { %p244_p13 = scmp.ne.s32.totalorder %s332_s2, %s243_s28  ;;  %p247_p0 = scmp.lt.u32.totalorder %s243_s28, %s332_s2 }
  0xcc   :  { %p249_p1 = pnand %p247_p0, %p244_p13 }
  0xce   :  { %252 = shalt.err (!%p249_p1)
}
  0xcf   :  { %197 = dma.vmem_to_hbm [thread:$0]  %s195_s24, 32, %s332_s2, [#allocation4]  }
  0xd0   :  { %255 = dma.done.wait [#allocation4], 32  }
  0xd1   :  { %256 = vsyncadd [#allocation4], 4294967264 }
  0xd2   :  { %201 = vsyncpa [#allocation3], 1 }
  0xd3   :  { %202 = vsyncpa [#allocation4], 1 }

</bundles_post_ra>
